<compile_context>
chip_gen: v7x
topology: tpu7x:2x2x1
jax: 0.10.0
libtpu: 0.0.40
codegen_flags: <defaults>
</compile_context>

<pallas_src>
import jax
import jax.numpy as jnp
import numpy as np
from jax.experimental import pallas as pl
from jax.experimental.pallas import tpu as pltpu


def _round_up(x, m):
    return (x + m - 1) // m * m


def _ffn_kernel(x_ref, w1_ref, w3_ref, w2_ref, o_ref, acc_ref):
    # x_ref  : (tm, dim)      activations (f32 or bf16)
    # w1_ref : (dim, th)      gate projection slice (weight dtype, e.g. bf16)
    # w3_ref : (dim, th)      up   projection slice
    # w2_ref : (th, dim)      down projection slice
    # o_ref  : (tm, dim)      output tile (written on the last hidden step)
    # acc_ref: (tm, dim) f32  accumulator, resident across the hidden axis
    k = pl.program_id(1)

    @pl.when(k == 0)
    def _init():
        acc_ref[...] = jnp.zeros_like(acc_ref)

    # Hoist the activation cast once; reuse it for both MXU projections.
    xc = x_ref[...].astype(w1_ref.dtype)

    h1 = jnp.dot(xc, w1_ref[...], preferred_element_type=jnp.float32)
    h3 = jnp.dot(xc, w3_ref[...], preferred_element_type=jnp.float32)

    # SiLU(h1) * h3 entirely in f32 (VPU + EUP).
    g = h1 * jax.nn.sigmoid(h1) * h3

    # Down projection: cast to the weight dtype only at the matmul boundary.
    acc_ref[...] += jnp.dot(g.astype(w2_ref.dtype), w2_ref[...],
                            preferred_element_type=jnp.float32)

    @pl.when(k == pl.num_programs(1) - 1)
    def _finalize():
        o_ref[...] = acc_ref[...].astype(o_ref.dtype)


def feed_forward(x, w1, w3, w2, *, block_m=256, block_h=1024, out_dtype=None):
    """SwiGLU FFN:  (silu(x @ w1) * (x @ w3)) @ w2.

    x:  (..., dim)
    w1: (dim, hidden), w3: (dim, hidden), w2: (hidden, dim)  — (in, out) layout,
    any float dtype (bf16 recommended).
    """
    if out_dtype is None:
        out_dtype = x.dtype
    *lead, dim = x.shape
    hidden = w1.shape[1]
    assert w1.shape == (dim, hidden), (w1.shape, dim, hidden)
    assert w3.shape == (dim, hidden), (w3.shape, dim, hidden)
    assert w2.shape == (hidden, dim), (w2.shape, dim, hidden)

    block_m = max(8, _round_up(block_m, 8))
    block_h = max(128, _round_up(block_h, 128))

    x2 = x.reshape(-1, dim)
    m = x2.shape[0]

    # ---- token (M) tiling --------------------------------------------------
    # >= 2 grid steps along the "parallel" token axis (v7x has 2 TensorCores);
    # tile is a multiple of 8 sublanes.  No activation padding: the last block
    # may be ragged and Pallas block-padding handles it (rows are independent).
    tm = min(block_m, _round_up(max(pl.cdiv(m, 2), 1), 8))
    num_i = pl.cdiv(m, tm)

    # ---- hidden (SwiGLU inner) tiling --------------------------------------
    # w1/w3 sliced on their output dim, w2 on its contraction dim.  Zero-pad
    # the weights (once) if hidden is not a multiple of the tile — exact for
    # SwiGLU: padded columns give silu(0)*0 = 0 and hit zero rows of w2.
    th = min(block_h, _round_up(hidden, 128))
    hidden_pad = _round_up(hidden, th)
    if hidden_pad != hidden:
        w1 = jnp.pad(w1, ((0, 0), (0, hidden_pad - hidden)))
        w3 = jnp.pad(w3, ((0, 0), (0, hidden_pad - hidden)))
        w2 = jnp.pad(w2, ((0, hidden_pad - hidden), (0, 0)))
    num_k = hidden_pad // th

    # Constant weight blocks (single hidden tile) need only one VMEM buffer;
    # when the hidden axis is tiled, keep default double buffering for overlap.
    w_bufs = 1 if num_k == 1 else 2
    w_kwargs = {"pipeline_mode": pl.Buffered(1)} if num_k == 1 else {}

    in_specs = [
        pl.BlockSpec((tm, dim), lambda i, k: (i, 0)),                    # x tile
        pl.BlockSpec((dim, th), lambda i, k: (0, k), **w_kwargs),        # w1
        pl.BlockSpec((dim, th), lambda i, k: (0, k), **w_kwargs),        # w3
        pl.BlockSpec((th, dim), lambda i, k: (k, 0), **w_kwargs),        # w2
    ]
    out_specs = pl.BlockSpec((tm, dim), lambda i, k: (i, 0))

    # ---- VMEM budget (with headroom) ---------------------------------------
    w_isz = jnp.dtype(w1.dtype).itemsize
    x_isz = jnp.dtype(x2.dtype).itemsize
    o_isz = jnp.dtype(out_dtype).itemsize
    vmem_needed = (
        w_bufs * (2 * dim * th + th * dim) * w_isz   # w1/w3/w2 slices
        + 2 * tm * dim * x_isz                       # double-buffered x tile
        + 2 * tm * dim * o_isz                       # double-buffered out tile
        + tm * dim * 4                               # f32 accumulator scratch
        + 3 * tm * th * 4)                           # live h1 / h3 / g values
    vmem_limit = int(min(max(int(vmem_needed * 1.5) + (4 << 20), 32 << 20),
                         100 << 20))

    # ---- advisory cost estimate (weights counted once, own itemsizes) -------
    flops = 6 * m * dim * hidden
    transcendentals = m * hidden
    bytes_accessed = (
        x2.size * x_isz
        + m * dim * o_isz
        + (w1.size + w3.size) * w_isz
        + w2.size * jnp.dtype(w2.dtype).itemsize)

    out = pl.pallas_call(
        _ffn_kernel,
        out_shape=jax.ShapeDtypeStruct((m, dim), out_dtype),
        grid=(num_i, num_k),
        in_specs=in_specs,
        out_specs=out_specs,
        scratch_shapes=[pltpu.VMEM((tm, dim), jnp.float32)],
        compiler_params=pltpu.CompilerParams(
            dimension_semantics=("parallel", "arbitrary"),
            vmem_limit_bytes=vmem_limit),
        cost_estimate=pl.CostEstimate(
            flops=flops,
            transcendentals=transcendentals,
            bytes_accessed=bytes_accessed),
    )(x2, w1, w3, w2)

    return out.reshape(*lead, dim)


def reference(x, w1, w3, w2):
    # Pure-JAX f32 reference mirroring the PyTorch module.
    h1 = x @ w1
    h3 = x @ w3
    return (h1 * jax.nn.sigmoid(h1) * h3) @ w2


if __name__ == "__main__":
    # Small but lane-dense shapes: dim = 128, hidden_dim = 192 so the SwiGLU
    # inner width is int(2 * 192 / 3) = 128, matching the PyTorch constructor.
    B, S = 2, 8
    DIM = 128
    HIDDEN_DIM = 192
    HIDDEN = int(2 * HIDDEN_DIM / 3)   # 128

    key = jax.random.PRNGKey(0)
    k_x, k_w1, k_w3, k_w2 = jax.random.split(key, 4)

    x = jax.random.normal(k_x, (B, S, DIM), jnp.float32)
    # bf16 weights, (in, out) layout (== PyTorch (out, in) weights transposed).
    w1 = (jax.random.normal(k_w1, (DIM, HIDDEN), jnp.float32) * 0.05).astype(jnp.bfloat16)
    w3 = (jax.random.normal(k_w3, (DIM, HIDDEN), jnp.float32) * 0.05).astype(jnp.bfloat16)
    w2 = (jax.random.normal(k_w2, (HIDDEN, DIM), jnp.float32) * 0.05).astype(jnp.bfloat16)

    out = feed_forward(x, w1, w3, w2)
    out = jax.block_until_ready(out)

    # f32 reference with the same (upcast) bf16 weights; loose tolerance covers
    # the bf16 rounding at the kernel's matmul boundaries.
    ref = reference(x, w1.astype(jnp.float32), w3.astype(jnp.float32),
                    w2.astype(jnp.float32))
    np.testing.assert_allclose(np.asarray(out), np.asarray(ref),
                               rtol=5e-2, atol=5e-3)
    print("KERNEL_OK")
</pallas_src>

<mosaic_0001>
module attributes {stable_mosaic.version = 11 : i64} {
  func.func @_ffn_kernel(%arg0: i32, %arg1: i32, %arg2: memref<8x128xf32, #tpu.memory_space<vmem>>, %arg3: memref<128x128xbf16, #tpu.memory_space<vmem>>, %arg4: memref<128x128xbf16, #tpu.memory_space<vmem>>, %arg5: memref<128x128xbf16, #tpu.memory_space<vmem>>, %arg6: memref<8x128xf32, #tpu.memory_space<vmem>>, %arg7: memref<8x128xf32, #tpu.memory_space<vmem>>) attributes {dimension_semantics = [#tpu.dimension_semantics<parallel>, #tpu.dimension_semantics<arbitrary>], iteration_bounds = array<i64: 2, 1>, scalar_prefetch = 0 : i64, scratch_operands = 1 : i64, tpu.core_type = #tpu.core_type<tc>, window_params = [{transform_indices = @transform_0, window_bounds = array<i64: 8, 128>}, {pipeline_mode = #tpu.pipeline_mode<synchronous>, transform_indices = @transform_1, window_bounds = array<i64: 128, 128>}, {pipeline_mode = #tpu.pipeline_mode<synchronous>, transform_indices = @transform_2, window_bounds = array<i64: 128, 128>}, {pipeline_mode = #tpu.pipeline_mode<synchronous>, transform_indices = @transform_3, window_bounds = array<i64: 128, 128>}, {transform_indices = @transform_4, window_bounds = array<i64: 8, 128>}]} {
    %c0_i32 = arith.constant 0 : i32
    %0 = arith.cmpi eq, %arg1, %c0_i32 : i32
    %1 = arith.extui %0 : i1 to i32
    %c0_i32_0 = arith.constant 0 : i32
    %2 = arith.cmpi ne, %1, %c0_i32_0 : i32
    scf.if %2 {
      %cst_17 = arith.constant 0.000000e+00 : f32
      %25 = vector.broadcast %cst_17 : f32 to vector<8x128xf32>
      %c0_18 = arith.constant 0 : index
      %c0_19 = arith.constant 0 : index
      %26 = vector.load %arg7[%c0_18, %c0_19] : memref<8x128xf32, #tpu.memory_space<vmem>>, vector<8x128xf32>
      tpu.vector_store %arg7[%c0_18, %c0_19], %25 {strides = array<i32>} : memref<8x128xf32, #tpu.memory_space<vmem>>, vector<8x128xf32>,
    } else {
    }
    %c0 = arith.constant 0 : index
    %c0_1 = arith.constant 0 : index
    %3 = vector.load %arg2[%c0, %c0_1] : memref<8x128xf32, #tpu.memory_space<vmem>>, vector<8x128xf32>
    %4 = arith.truncf %3 : vector<8x128xf32> to vector<8x128xbf16>
    %c0_2 = arith.constant 0 : index
    %c0_3 = arith.constant 0 : index
    %5 = vector.load %arg3[%c0_2, %c0_3] : memref<128x128xbf16, #tpu.memory_space<vmem>>, vector<128x128xbf16>
    %cst = arith.constant dense<0.000000e+00> : vector<8x128xf32>
    %6 = tpu.matmul %4, %5, %cst {dimension_numbers = #tpu.dot_dimension_numbers<[1], [0], [0], [1], [0, 0, 1, 1], [], []>} : vector<8x128xbf16>, vector<128x128xbf16>, vector<8x128xf32> -> vector<8x128xf32>
    %c0_4 = arith.constant 0 : index
    %c0_5 = arith.constant 0 : index
    %7 = vector.load %arg4[%c0_4, %c0_5] : memref<128x128xbf16, #tpu.memory_space<vmem>>, vector<128x128xbf16>
    %cst_6 = arith.constant dense<0.000000e+00> : vector<8x128xf32>
    %8 = tpu.matmul %4, %7, %cst_6 {dimension_numbers = #tpu.dot_dimension_numbers<[1], [0], [0], [1], [0, 0, 1, 1], [], []>} : vector<8x128xbf16>, vector<128x128xbf16>, vector<8x128xf32> -> vector<8x128xf32>
    %9 = arith.negf %6 : vector<8x128xf32>
    %10 = math.exp %9 : vector<8x128xf32>
    %cst_7 = arith.constant 1.000000e+00 : f32
    %11 = vector.broadcast %cst_7 : f32 to vector<8x128xf32>
    %12 = arith.addf %11, %10 : vector<8x128xf32>
    %13 = arith.divf %11, %12 : vector<8x128xf32>
    %14 = arith.mulf %6, %13 : vector<8x128xf32>
    %15 = arith.mulf %14, %8 : vector<8x128xf32>
    %c0_8 = arith.constant 0 : index
    %c0_9 = arith.constant 0 : index
    %16 = vector.load %arg7[%c0_8, %c0_9] : memref<8x128xf32, #tpu.memory_space<vmem>>, vector<8x128xf32>
    %17 = arith.truncf %15 : vector<8x128xf32> to vector<8x128xbf16>
    %c0_10 = arith.constant 0 : index
    %c0_11 = arith.constant 0 : index
    %18 = vector.load %arg5[%c0_10, %c0_11] : memref<128x128xbf16, #tpu.memory_space<vmem>>, vector<128x128xbf16>
    %cst_12 = arith.constant dense<0.000000e+00> : vector<8x128xf32>
    %19 = tpu.matmul %17, %18, %cst_12 {dimension_numbers = #tpu.dot_dimension_numbers<[1], [0], [0], [1], [0, 0, 1, 1], [], []>} : vector<8x128xbf16>, vector<128x128xbf16>, vector<8x128xf32> -> vector<8x128xf32>
    %20 = arith.addf %16, %19 : vector<8x128xf32>
    %c0_13 = arith.constant 0 : index
    %c0_14 = arith.constant 0 : index
    %21 = vector.load %arg7[%c0_13, %c0_14] : memref<8x128xf32, #tpu.memory_space<vmem>>, vector<8x128xf32>
    tpu.vector_store %arg7[%c0_13, %c0_14], %20 {strides = array<i32>} : memref<8x128xf32, #tpu.memory_space<vmem>>, vector<8x128xf32>,
    %c0_i32_15 = arith.constant 0 : i32
    %22 = arith.cmpi eq, %arg1, %c0_i32_15 : i32
    %23 = arith.extui %22 : i1 to i32
    %c0_i32_16 = arith.constant 0 : i32
    %24 = arith.cmpi ne, %23, %c0_i32_16 : i32
    scf.if %24 {
      %c0_17 = arith.constant 0 : index
      %c0_18 = arith.constant 0 : index
      %25 = vector.load %arg7[%c0_17, %c0_18] : memref<8x128xf32, #tpu.memory_space<vmem>>, vector<8x128xf32>
      %c0_19 = arith.constant 0 : index
      %c0_20 = arith.constant 0 : index
      %26 = vector.load %arg6[%c0_19, %c0_20] : memref<8x128xf32, #tpu.memory_space<vmem>>, vector<8x128xf32>
      tpu.vector_store %arg6[%c0_19, %c0_20], %25 {strides = array<i32>} : memref<8x128xf32, #tpu.memory_space<vmem>>, vector<8x128xf32>,
    } else {
    }
    return
  }
  func.func @transform_0(%arg0: i32, %arg1: i32) -> (i32, i32) {
    %c0_i32 = arith.constant 0 : i32
    %c0_i32_0 = arith.constant 0 : i32
    return %arg0, %c0_i32 : i32, i32
  }
  func.func @transform_1(%arg0: i32, %arg1: i32) -> (i32, i32) {
    %c0_i32 = arith.constant 0 : i32
    %c0_i32_0 = arith.constant 0 : i32
    return %c0_i32, %arg1 : i32, i32
  }
  func.func @transform_2(%arg0: i32, %arg1: i32) -> (i32, i32) {
    %c0_i32 = arith.constant 0 : i32
    %c0_i32_0 = arith.constant 0 : i32
    return %c0_i32, %arg1 : i32, i32
  }
  func.func @transform_3(%arg0: i32, %arg1: i32) -> (i32, i32) {
    %c0_i32 = arith.constant 0 : i32
    %c0_i32_0 = arith.constant 0 : i32
    return %arg1, %c0_i32 : i32, i32
  }
  func.func @transform_4(%arg0: i32, %arg1: i32) -> (i32, i32) {
    %c0_i32 = arith.constant 0 : i32
    %c0_i32_0 = arith.constant 0 : i32
    return %arg0, %c0_i32 : i32, i32
  }
}

</mosaic_0001>

<bundles_post_ra>
// kernel: tpu_custom_call.1
= control target key start
LH: loop header
LB: loop body
LE: loop exit
PB: predicated region body
PF: predicated region fallthrough
CT: control target
= control target key end

     0   :  { %9 = vsyncpa [#allocation4], 0  ;;  %s1573_s0 = inlined_call_operand.hbm [shape: f32[16,128], index: 0, kind: input, shape index: {}]   ;;  %s1574_s1 = inlined_call_operand.hbm [shape: bf16[128,128], index: 1, kind: input, shape index: {}]   ;;  %s1575_s2 = inlined_call_operand.hbm [shape: bf16[128,128], index: 2, kind: input, shape index: {}]   ;;  %s1576_s3 = inlined_call_operand.hbm [shape: bf16[128,128], index: 3, kind: input, shape index: {}]   ;;  %s1577_s4 = inlined_call_operand.hbm [shape: f32[16,128], index: 4, kind: output, shape index: {}]  }
   0x1   :  { %11 = vsyncpa [#allocation4 + $0x1], 0 }
   0x2   :  { %12 = vsyncpa [#allocation7], 0 }
   0x3   :  { %13 = vsyncpa [#allocation10], 0 }
   0x4   :  { %14 = vsyncpa [#allocation5], 0 }
   0x5   :  { %16 = vsyncpa [#allocation5 + $0x1], 0  ;;  %s1252_s15 = smov 0   ;;  %s1254_s16 = smov 0  }
   0x6   :  { %s1256_s17 = smov 0   ;;  %s1258_s18 = smov 0  }
   0x7   :  { %s1260_s19 = smov 0   ;;  %s1262_s20 = smov 0  }
   0x8 LB: > { %s756_s21 = sadd.s32 4294967295, %s1216_s20   ;;  %s757_s22 = sadd.s32 4294967294, %s1216_s20   ;;  %s1216_s20 = sphi %s1262_s20, %s22_s20   ;;  %s1212_s19 = sphi %s1260_s19, %s1604_s19   ;;  %s1208_s18 = sphi %s1258_s18, %s1603_s18   ;;  %s1204_s17 = sphi %s1256_s17, %s1602_s17   ;;  %s1200_s16 = sphi %s1254_s16, %s1601_s16   ;;  %s1196_s15 = sphi %s1252_s15, %s1600_s15  }
   0x9   : > { %p54_p0 = scmp.ne.s32.totalorder %s1200_s16, %s1196_s15  ;;  %p1286_p1 = scmp.eq.s32.totalorder %s756_s21, 0 }
   0xa   : > { %p1290_p2 = scmp.eq.s32.totalorder %s756_s21, 1  ;;  %p162_p3 = scmp.eq.s32.totalorder %s757_s22, 1 }
   0xb   : > { %s1583_s23 = scalar_select %p1286_p1, 1, 0 }
   0xc   : > { %s1584_s24 = scalar_select %p1290_p2, 1, 0 }
   0xd   : > { %p1296_p4 = por %p1286_p1, %p54_p0  ;;  %p758_p5 = scmp.ge.s32.totalorder %s1216_s20, 1 }
   0xe   : > { %p1301_p6 = por %p162_p3, %p54_p0  ;;  %p169_p7 = scmp.lt.s32.totalorder %s1216_s20, 3 }
   0xf   : > { %s1585_s25 = scalar_select %p1296_p4, 1, 0 }
  0x10   : > { %s1586_s26 = scalar_select %p1301_p6, 1, 0 }
  0x11   : > { %p1306_p8 = pnand %p758_p5, %p169_p7  ;;  %s1218_s28 = smov [#allocation6]  }
  0x12   : > { %1587 = sst [smem:[#allocation16_spill]] %s1586_s26  ;;  %s183_s29 = sshll.u32 %s1218_s28, 4  ;;  %s1310_s29 = int_to_ptr.vmem [resolvable:$true] %s183_s29 }
  0x13   : > { %s1588_s27 = scalar_select %p1306_p8, 1, 0 }
  0x14   : > { %p903_p9 = pneg %p1306_p8  ;;  %s1219_s5 = smov [#allocation8]  }
  0x15   : > { %s198_s6 = sshll.u32 %s1219_s5, 4  ;;  %s1220_s7 = smov [#allocation9]   ;;  %s1321_s6 = int_to_ptr.vmem [resolvable:$true] %s198_s6 }
  0x16   : > { %p1317_p11 = pnand %p903_p9, %p1286_p1  ;;  %s1323_s8 = sshll.u32 %s1220_s7, 4  ;;  %s215_s8 = int_to_ptr.vmem [resolvable:$true] %s1323_s8 }
  0x17   : > { %s1012_s11 = scalar_lea.hbm %s1574_s1, 1024 }
  0x18   : > { %p1013_p12 = scmp.ne.s32.totalorder %s1574_s1, %s1012_s11  ;;  %p1333_p13 = pneg %p1317_p11 }
  0x19   : > { %p1019_p5 = scmp.lt.u32.totalorder %s1012_s11, %s1574_s1 }
  0x1a   : > { %p1015_p0 = pnand %p1333_p13, %p1013_p12 }
  0x1c   : > { %p1016_p3 = pneg %p1015_p0 }
  0x1e   : > { %p1021_p7 = pnand %p1019_p5, %p1016_p3 }
  0x20   : > { %1024 = shalt.err (!%p1021_p7)
}
  0x21   : > { %s1025_s28 = scalar_lea.vmem %s1310_s29, 1024  ;;  %p1033_p1 = scmp.lt.s32.totalorder %s1310_s29, %s1310_s29 }
  0x22   : > { %p1026_p9 = scmp.ne.s32.totalorder %s1310_s29, %s1025_s28  ;;  %p1034_p4 = scmp.lt.s32.totalorder %s1025_s28, %s1025_s28 }
  0x24   : > { %p1028_p10 = pnand %p1026_p9, %p1333_p13  ;;  %p1035_p12 = por %p1034_p4, %p1033_p1 }
  0x26   : > { %p1029_p6 = pneg %p1028_p10 }
  0x28   : > { %p1036_p0 = pnand %p1035_p12, %p1029_p6 }
  0x2a   : > { %1039 = shalt.err (!%p1036_p0)
}
  0x2b   : > { %s1221_s5 = smov 64   ;;  %s1222_s7 = smov 4  }
  0x2c   : > { %906 = dma.hbm_to_vmem [thread:$0]  (!%p1317_p11), %s1574_s1, 1024, %s1310_s29, [#allocation7], %s1221_s5, %s1221_s5, %s1222_s7  }
  0x2d   : > { %s1040_s13 = scalar_lea.hbm %s1575_s2, 1024 }
  0x2e   : > { %p1041_p1 = scmp.ne.s32.totalorder %s1575_s2, %s1040_s13  ;;  %p1047_p10 = scmp.lt.u32.totalorder %s1040_s13, %s1575_s2 }
  0x30   : > { %p1043_p4 = pnand %p1041_p1, %p1333_p13 }
  0x32   : > { %p1044_p6 = pneg %p1043_p4 }
  0x34   : > { %p1049_p3 = pnand %p1047_p10, %p1044_p6 }
  0x36   : > { %1052 = shalt.err (!%p1049_p3)
}
  0x37   : > { %s1053_s29 = scalar_lea.vmem %s1321_s6, 1024  ;;  %p1061_p12 = scmp.lt.s32.totalorder %s1321_s6, %s1321_s6 }
  0x38   : > { %p1054_p5 = scmp.ne.s32.totalorder %s1321_s6, %s1053_s29  ;;  %p1062_p0 = scmp.lt.s32.totalorder %s1053_s29, %s1053_s29 }
  0x3a   : > { %p1056_p7 = pnand %p1054_p5, %p1333_p13  ;;  %p1063_p1 = por %p1062_p0, %p1061_p12 }
  0x3c   : > { %p1057_p9 = pneg %p1056_p7 }
  0x3e   : > { %p1064_p4 = pnand %p1063_p1, %p1057_p9 }
  0x40   : > { %1067 = shalt.err (!%p1064_p4)
}
  0x41   : > { %909 = dma.hbm_to_vmem [thread:$0]  (!%p1317_p11), %s1575_s2, 1024, %s1321_s6, [#allocation7], %s1221_s5, %s1221_s5, %s1222_s7  }
  0x42   : > { %s1068_s12 = scalar_lea.hbm %s1576_s3, 1024 }
  0x43   : > { %p1069_p6 = scmp.ne.s32.totalorder %s1576_s3, %s1068_s12  ;;  %p1075_p5 = scmp.lt.u32.totalorder %s1068_s12, %s1576_s3 }
  0x45   : > { %p1071_p10 = pnand %p1069_p6, %p1333_p13 }
  0x47   : > { %p1072_p3 = pneg %p1071_p10 }
  0x49   : > { %p1077_p7 = pnand %p1075_p5, %p1072_p3 }
  0x4b   : > { %1080 = shalt.err (!%p1077_p7)
}
  0x4c   : > { %s1081_s29 = scalar_lea.vmem %s215_s8, 1024  ;;  %p1089_p1 = scmp.lt.s32.totalorder %s215_s8, %s215_s8 }
  0x4d   : > { %p1082_p9 = scmp.ne.s32.totalorder %s215_s8, %s1081_s29  ;;  %p1090_p4 = scmp.lt.s32.totalorder %s1081_s29, %s1081_s29 }
  0x4f   : > { %p1084_p12 = pnand %p1082_p9, %p1333_p13  ;;  %p1091_p8 = por %p1090_p4, %p1089_p1 }
  0x51   : > { %p1085_p0 = pneg %p1084_p12 }
  0x53   : > { %p1092_p2 = pnand %p1091_p8, %p1085_p0 }
  0x55   : > { %1095 = shalt.err (!%p1092_p2)
}
  0x56   : > { %912 = dma.hbm_to_vmem [thread:$0]  (!%p1317_p11), %s1576_s3, 1024, %s215_s8, [#allocation10], %s1221_s5, %s1221_s5, %s1222_s7  }
  0x57   : > { %s41_s14 = sadd.s32 1, %s1204_s17  ;;  %s34_s30 = sadd.s32 1, %s1212_s19 }
  0x58   : > { %p48_p2 = scmp.ne.s32.totalorder %s1204_s17, %s1200_s16  ;;  %p36_p8 = scmp.ge.s32.totalorder %s34_s30, 2 }
  0x59   : > { %p49_p13 = scmp.eq.s32.totalorder %s1216_s20, 0  ;;  %p1591_p6 = scmp.ne.s32.totalorder %s1584_s24, 0 }
  0x5a   : > { %p924_p3 = scmp.lt.s32.totalorder %s1216_s20, 2  ;;  %s1606_s30 = smov (%p36_p8, %s34_s30), 0 }
  0x5b   : > { %p1412_p10 = por %p1591_p6, %p48_p2  ;;  %p50_p5 = por %p49_p13, %p48_p2 }
  0x5c   : > { %s228_s10 = sand.u32 1, %s1204_s17   ;;  %s38_s11 = ssub.s32 %s1212_s19, %s1606_s30 }
  0x5d   : > { %p39_p7 = scmp.eq.s32.totalorder %s38_s11, 0  ;;  %s763_s8 = sshll.u32 %s228_s10, 3 }
  0x5e   : > { %s764_s5 = sshll.u32 %s1212_s19, 7  ;;  %s232_s21 = scalar_lea.vmem [#allocation3], %s763_s8 }
  0x5f   : > { %s1424_s7 = scalar_select %p39_p7, %s1204_s17, %s41_s14  }
  0x60   : > { %s1429_s24 = scalar_lea.hbm %s1573_s0, %s764_s5  ;;  %s239_s22 = sshll.u32 %s232_s21, 4  ;;  %s1431_s22 = int_to_ptr.vmem [resolvable:$true] %s239_s22 }
  0x61   : > { %p1435_p11 = pnand %p924_p3, %p50_p5  ;;  %s229_s29 = scalar_lea.sflag [#allocation4], %s228_s10 }
  0x62   : > { %s1096_s6 = scalar_lea.hbm %s1429_s24, 128  ;;  %s1101_s11 = scalar_lea.hbm %s1573_s0, 256 }
  0x63   : > { %p1097_p9 = scmp.ne.s32.totalorder %s1429_s24, %s1096_s6  ;;  %p1098_p12 = pneg %p1435_p11 }
  0x64   : > { %p1102_p4 = scmp.lt.u32.totalorder %s1429_s24, %s1573_s0  ;;  %p1103_p2 = scmp.lt.u32.totalorder %s1101_s11, %s1096_s6 }
  0x65   : > { %p1099_p0 = pnand %p1098_p12, %p1097_p9  ;;  %p1105_p13 = scmp.lt.u32.totalorder %s1096_s6, %s1429_s24 }
  0x66   : > { %p1104_p8 = por %p1103_p2, %p1102_p4 }
  0x67   : > { %p1100_p1 = pneg %p1099_p0 }
  0x68   : > { %p1106_p6 = por %p1105_p13, %p1104_p8 }
  0x6a   : > { %p1107_p3 = pnand %p1106_p6, %p1100_p1 }
  0x6c   : > { %1110 = shalt.err (!%p1107_p3)
}
  0x6d   : > { %s1111_s10 = scalar_lea.vmem %s1431_s22, 128  ;;  %s1223_s12 = smov [#allocation3]  }
  0x6e   : > { %p1112_p5 = scmp.ne.s32.totalorder %s1431_s22, %s1111_s10  ;;  %s1116_s13 = sshll.u32 %s1223_s12, 4  ;;  %s1117_s13 = int_to_ptr.vmem [resolvable:$false] %s1116_s13 }
  0x6f   : > { %s1118_s21 = scalar_lea.vmem %s1117_s13, 256  ;;  %p1119_p0 = scmp.lt.s32.totalorder %s1431_s22, %s1117_s13 }
  0x70   : > { %p1114_p7 = pnand %p1112_p5, %p1098_p12  ;;  %p1120_p4 = scmp.lt.s32.totalorder %s1118_s21, %s1111_s10 }
  0x72   : > { %p1115_p9 = pneg %p1114_p7  ;;  %p1121_p2 = por %p1120_p4, %p1119_p0 }
  0x74   : > { %p1122_p8 = pnand %p1121_p2, %p1115_p9 }
  0x76   : > { %1125 = shalt.err (!%p1122_p8)
}
  0x77   : > { %916 = dma.hbm_to_vmem [thread:$0]  (!%p1435_p11), %s1429_s24, 128, %s1431_s22, %s229_s29  }
  0x78   : > { %p1594_p1 = scmp.ne.s32.totalorder %s1588_s27, 0 }
  0x79   : > { %s1467_s6 = sand.u32 (!%p1594_p1), 1, %s1200_s16   ;;  %p1595_p12 = scmp.ne.s32.totalorder (!%p1594_p1), %s1585_s25, 0 }
  0x7a   : > { %248 = sbr.rel (%p1594_p1) target bundleno = 640 (0x280), region = 36  ;;  %s766_s26 = sshll.u32 (!%p1594_p1), %s1467_s6, 3 }
  0x7b   : > { %s251_s14 = scalar_lea.sflag (!%p1594_p1), [#allocation4], %s1467_s6  ;;  %s1473_s11 = scalar_lea.vmem (!%p1594_p1), [#allocation3], %s766_s26 }
  0x81   : > { %1179 = dma.done.wait (%p1595_p12), %s251_s14, 128  }
  0x82   : > { %1181 = vsyncadd (%p1595_p12), %s251_s14, 4294967168  ;;  %p1596_p11 = scmp.ne.s32.totalorder %s1583_s23, 0 }
  0x84   : > { %1183 = dma.done.wait (%p1596_p11), [#allocation7], 2048  }
  0x85   : > { %1185 = vsyncadd (%p1596_p11), [#allocation7], 4294965248 }
  0x86   : > { %1187 = dma.done.wait (%p1596_p11), [#allocation10], 1024  }
  0x87   : > { %1189 = vsyncadd (%p1596_p11), [#allocation10], 4294966272  ;;  %v1224_v0 = vmov 0.0   ;;  %vm1225_vm0 = vmmov 0   ;;  %v984_v1 = vld [vmem:[#allocation6] sm:$0xff]   ;;  %v985_v2 = vld [vmem:[#allocation6 + $0x8] sm:$0xff]  }
  0x88   : > { %827 = vmatprep.subr.bf16.mxu0 %v1224_v0  ;;  %847 = vmatprep.subr.bf16.mxu1 %v1224_v0  ;;  %v986_v3 = vld [vmem:[#allocation6 + $0x10] sm:$0xff]   ;;  %v991_v4 = vld [vmem:[#allocation8] sm:$0xff]   ;;  %v993_v5 = vld [vmem:[#allocation8 + $0x8] sm:$0xff]   ;;  %s290_s23 = scalar_lea.vmem [#allocation11], %s766_s26  ;;  %s797_s27 = sshll.u32 %s1208_s18, 7 }
  0x89   : > { %843 = vmatprep.mubr.msk.bf16.mxu0 %vm1225_vm0, %v1224_v0  ;;  %863 = vmatprep.mubr.msk.bf16.mxu1 %vm1225_vm0, %v1224_v0  ;;  %v987_v6 = vld [vmem:[#allocation6 + $0x18] sm:$0xff]   ;;  %v994_v7 = vld [vmem:[#allocation8 + $0x10] sm:$0xff]   ;;  %v988_v8 = vld [vmem:[#allocation6 + $0x20] sm:$0xff]   ;;  %s643_s25 = sshll.u32 %s290_s23, 4  ;;  %s1526_s28 = scalar_lea.hbm %s1577_s4, %s797_s27  ;;  %s1521_s25 = int_to_ptr.vmem [resolvable:$true] %s643_s25 }
  0x8a   : > { %828 = vmatpush3.bf16.msra.mxu0 %v984_v1  ;;  %848 = vmatpush3.bf16.msra.mxu1 %v991_v4  ;;  %v989_v9 = vld [vmem:[#allocation6 + $0x28] sm:$0xff]   ;;  %v995_v10 = vld [vmem:[#allocation8 + $0x18] sm:$0xff]   ;;  %v996_v11 = vld [vmem:[#allocation8 + $0x20] sm:$0xff]   ;;  %s630_s29 = scalar_lea.sflag [#allocation5], %s1467_s6  ;;  %s1126_s8 = scalar_lea.vmem %s1521_s25, 128 }
  0x8b   : > { %829 = vmatprep.subr.bf16.mxu0 %v1224_v0  ;;  %849 = vmatprep.subr.bf16.mxu1 %v1224_v0  ;;  %v990_v12 = vld [vmem:[#allocation6 + $0x30] sm:$0xff]   ;;  %v997_v13 = vld [vmem:[#allocation8 + $0x28] sm:$0xff]   ;;  %v992_v14 = vld [vmem:[#allocation6 + $0x38] sm:$0xff]   ;;  %p1127_p13 = scmp.ne.s32.totalorder %s1521_s25, %s1126_s8  ;;  %s1226_s18 = smov [#allocation11]  }
  0x8c   : > { %v298_v15 = vld [vmem:[%s1473_s11] sm:$0xff]  ;;  %v1000_v19 = vld [vmem:[#allocation9] sm:$0xff]   ;;  %v1001_v20 = vld [vmem:[#allocation9 + $0x8] sm:$0xff]   ;;  %s1130_s5 = sshll.u32 %s1226_s18, 4  ;;  %s1131_s5 = int_to_ptr.vmem [resolvable:$false] %s1130_s5 }
  0x8d   : > { %v299_v16 = vpack.c.bf16 %v298_v15, %v298_v15  ;;  %v998_v17 = vld [vmem:[#allocation8 + $0x30] sm:$0xff]   ;;  %v999_v18 = vld [vmem:[#allocation8 + $0x38] sm:$0xff]   ;;  %v1004_v23 = vld [vmem:[#allocation9 + $0x20] sm:$0xff]   ;;  %p1128_p6 = pnand %p1127_p13, %p1412_p10  ;;  %s1132_s10 = scalar_lea.vmem %s1131_s5, 256 }
  0x8e   : > { %830 = vmatpush3.bf16.msra.mxu0 %v985_v2  ;;  %850 = vmatpush3.bf16.msra.mxu1 %v993_v5  ;;  %v1002_v21 = vld [vmem:[#allocation9 + $0x10] sm:$0xff]   ;;  %v1003_v22 = vld [vmem:[#allocation9 + $0x18] sm:$0xff]   ;;  %v1005_v24 = vld [vmem:[#allocation9 + $0x28] sm:$0xff]   ;;  %p1133_p5 = scmp.lt.s32.totalorder %s1521_s25, %s1131_s5  ;;  %p1134_p7 = scmp.lt.s32.totalorder %s1132_s10, %s1126_s8 }
  0x8f   : > { %831 = vmatprep.subr.bf16.mxu0 %v1224_v0  ;;  %851 = vmatprep.subr.bf16.mxu1 %v1224_v0  ;;  %v1006_v25 = vld [vmem:[#allocation9 + $0x30] sm:$0xff]   ;;  %v1007_v26 = vld [vmem:[#allocation9 + $0x38] sm:$0xff]   ;;  %p1129_p3 = pneg %p1128_p6 }
  0x90   : > { %p1135_p9 = por %p1134_p7, %p1133_p5 }
  0x92   : > { %832 = vmatpush3.bf16.msra.mxu0 %v986_v3  ;;  %852 = vmatpush3.bf16.msra.mxu1 %v994_v7  ;;  %p1136_p0 = pnand %p1135_p9, %p1129_p3 }
  0x93   : > { %833 = vmatprep.subr.bf16.mxu0 %v1224_v0  ;;  %853 = vmatprep.subr.bf16.mxu1 %v1224_v0 }
  0x96   : > { %834 = vmatpush3.bf16.msra.mxu0 %v987_v6  ;;  %854 = vmatpush3.bf16.msra.mxu1 %v995_v10 }
  0x97   : > { %835 = vmatprep.subr.bf16.mxu0 %v1224_v0  ;;  %855 = vmatprep.subr.bf16.mxu1 %v1224_v0 }
  0x9a   : > { %836 = vmatpush3.bf16.msra.mxu0 %v988_v8  ;;  %856 = vmatpush3.bf16.msra.mxu1 %v996_v11 }
  0x9b   : > { %837 = vmatprep.subr.bf16.mxu0 %v1224_v0  ;;  %857 = vmatprep.subr.bf16.mxu1 %v1224_v0 }
  0x9e   : > { %838 = vmatpush3.bf16.msra.mxu0 %v989_v9  ;;  %858 = vmatpush3.bf16.msra.mxu1 %v997_v13 }
  0x9f   : > { %839 = vmatprep.subr.bf16.mxu0 %v1224_v0  ;;  %859 = vmatprep.subr.bf16.mxu1 %v1224_v0 }
  0xa2   : > { %840 = vmatpush3.bf16.msra.mxu0 %v990_v12  ;;  %860 = vmatpush3.bf16.msra.mxu1 %v998_v17 }
  0xa3   : > { %841 = vmatprep.subr.bf16.mxu0 %v1224_v0  ;;  %861 = vmatprep.subr.bf16.mxu1 %v1224_v0 }
  0xa6   : > { %842 = vmatpush3.bf16.msra.mxu0 %v992_v14  ;;  %862 = vmatpush3.bf16.msra.mxu1 %v999_v18 }
  0xa7   : > { %867 = vmatprep.subr.bf16.mxu0 %v1224_v0 }
  0xa9   : > { %844 = vmatmul.mubr.bf16.vlgmr.msra.gmra.mrb[0].mxu0 %v299_v16  ;;  %864 = vmatmul.mubr.bf16.vlgmr.msra.gmra.mrb[0].mxu1 %v299_v16 }
  0xaa   : > { %883 = vmatprep.mubr.msk.bf16.mxu0 %vm1225_vm0, %v1224_v0  ;;  %868 = vmatpush3.bf16.msra.mxu0 %v1000_v19 }
  0xab   : > { %869 = vmatprep.subr.bf16.mxu0 %v1224_v0 }
  0xae   : > { %870 = vmatpush3.bf16.msra.mxu0 %v1001_v20 }
  0xaf   : > { %871 = vmatprep.subr.bf16.mxu0 %v1224_v0 }
  0xb2   : > { %872 = vmatpush3.bf16.msra.mxu0 %v1002_v21 }
  0xb3   : > { %873 = vmatprep.subr.bf16.mxu0 %v1224_v0 }
  0xb6   : > { %874 = vmatpush3.bf16.msra.mxu0 %v1003_v22 }
  0xb7   : > { %875 = vmatprep.subr.bf16.mxu0 %v1224_v0 }
  0xba   : > { %876 = vmatpush3.bf16.msra.mxu0 %v1004_v23 }
  0xbb   : > { %877 = vmatprep.subr.bf16.mxu0 %v1224_v0 }
  0xbe   : > { %878 = vmatpush3.bf16.msra.mxu0 %v1005_v24 }
  0xbf   : > { %879 = vmatprep.subr.bf16.mxu0 %v1224_v0 }
  0xc2   : > { %880 = vmatpush3.bf16.msra.mxu0 %v1006_v25 }
  0xc3   : > { %881 = vmatprep.subr.bf16.mxu0 %v1224_v0 }
  0xc6   : > { %882 = vmatpush3.bf16.msra.mxu0 %v1007_v26 }
 0x17c   : > { %v398_v27 = vpop.f32.mrb[0].mxu0  ;;  %v502_v32 = vpop.f32.mrb[0].mxu1 }
 0x17d   : > { %v787_v28 = vmul.f32 -1.442695, %v398_v27  ;;  %v845_v29 = vpop.f32.mrb[1].mxu0  ;;  %v865_v33 = vpop.f32.mrb[1].mxu1 }
 0x17e   : > { %v401_v30 = vpop.f32.mrb[2].mxu0  ;;  %v505_v34 = vpop.f32.mrb[2].mxu1 }
 0x17f   : > { %1008 = vpow2.f32 %v787_v28  ;;  %v846_v31 = vpop.f32.mrb[3].mxu0  ;;  %v866_v35 = vpop.f32.mrb[3].mxu1 }
 0x189   : > { %v1009_v36 = vpop.eup %1008 }
 0x18a   : > { %v511_v37 = vadd.f32 1.0, %v1009_v36 }
 0x18c   : > { %1010 = vrcp.f32 %v511_v37 }
 0x196   : > { %v1011_v38 = vpop.eup %1010 }
 0x197   : > { %v514_v39 = vmul.f32 %v1011_v38, %v398_v27 }
 0x199   : > { %v515_v40 = vmul.f32 %v514_v39, %v502_v32 }
 0x19b   : > { %v517_v41 = vpack.c.bf16 %v515_v40, %v515_v40 }
 0x19d   : > { %884 = vmatmul.mubr.bf16.vlgmr.msra.gmra.mrb[4].mxu0 %v517_v41 }
 0x270   : > { %v616_v42 = vpop.f32.mrb[4].mxu0 }
 0x271   : > { %628 = vst [vmem:[%s290_s23] sm:$0xff] %v616_v42  ;;  %v885_v43 = vpop.f32.mrb[5].mxu0 }
 0x272   : > { %v619_v44 = vpop.f32.mrb[6].mxu0 }
 0x273   : > { %1139 = shalt.err (!%p1136_p0)
}
 0x274   : > { %s1140_s12 = scalar_lea.hbm %s1526_s28, 128  ;;  %s1144_s6 = scalar_lea.hbm %s1577_s4, 256 }
 0x275   : > { %p1141_p4 = scmp.ne.s32.totalorder %s1526_s28, %s1140_s12  ;;  %p1145_p1 = scmp.lt.u32.totalorder %s1526_s28, %s1577_s4 }
 0x276   : > { %p1146_p12 = scmp.lt.u32.totalorder %s1144_s6, %s1140_s12  ;;  %p1148_p13 = scmp.lt.u32.totalorder %s1140_s12, %s1526_s28 }
 0x277   : > { %p1142_p2 = pnand %p1141_p4, %p1412_p10 }
 0x278   : > { %p1147_p11 = por %p1146_p12, %p1145_p1 }
 0x279   : > { %p1143_p8 = pneg %p1142_p2 }
 0x27a   : > { %p1149_p6 = por %p1148_p13, %p1147_p11 }
 0x27c   : > { %p1150_p3 = pnand %p1149_p6, %p1143_p8 }
 0x27e   : > { %1153 = shalt.err (!%p1150_p3)
}
 0x27f   : > { %901 = dma.vmem_to_hbm [thread:$0]  (%p1412_p10), %s1521_s25, 128, %s1526_s28, %s630_s29   ;;  %v886_v45 = vpop.f32.mrb[7].mxu0 }
 0x280 PF: > { %s1597_s11 = sld [smem:[#allocation16_spill]]  ;;  %s655_s23 = sand.u32 1, %s1196_s15  }
 0x281   : > { %p1599_p7 = scmp.ge.s32.totalorder %s1216_s20, 2  ;;  %s656_s27 = scalar_lea.sflag [#allocation5], %s655_s23 }
 0x286   : > { %p1598_p5 = scmp.ne.s32.totalorder %s1597_s11, 0 }
 0x288   : > { %p918_p9 = pnand %p1599_p7, %p1598_p5 }
 0x28a   : > { %1191 = dma.done.wait (!%p918_p9), %s656_s27, 128  }
 0x28b   : > { %1193 = vsyncadd (!%p918_p9), %s656_s27, 4294967168  ;;  %s22_s20 = sadd.s32 1, %s1216_s20   ;;  %s1600_s15 = smov %s1200_s16 }
 0x28c   : > { %p19_p0 = scmp.ge.s32.totalorder %s22_s20, 4   ;;  %s1601_s16 = smov %s1204_s17 }
 0x28d   : > { %s1602_s17 = smov %s1424_s7  ;;  %s1603_s18 = smov %s1212_s19 }
 0x28e   : > { %s1604_s19 = smov %s1606_s30  ;;  %21 = sbr.rel (!%p19_p0) target bundleno = 8 (0x8), region = 104 }
 0x295   :  { %661 = vsyncpa [#allocation4], 1 }
 0x296   :  { %663 = vsyncpa [#allocation4 + $0x1], 1 }
 0x297   :  { %664 = vsyncpa [#allocation7], 1 }
 0x298   :  { %665 = vsyncpa [#allocation10], 1 }
 0x299   :  { %666 = vsyncpa [#allocation5], 1 }
 0x29a   :  { %668 = vsyncpa [#allocation5 + $0x1], 1 }

</bundles_post_ra>
